<compile_context>
chip_gen: v5e
topology: v5e:2x2
jax: 0.10.0
libtpu: 0.0.40
codegen_flags: <defaults>
</compile_context>

<pallas_src>
import jax
import jax.numpy as jnp
from jax import lax
from jax.experimental import pallas as pl
from jax.experimental.pallas import tpu as pltpu


def _fuseup_kernel(x_ref, wt_ref, shift_ref, up_ref, o_ref):
    # x_ref:     (196, C_in)         tokens of one batch element (natural layout)
    # wt_ref:    (C_out, C_in)       conv weight, BN scale folded in, transposed
    # shift_ref: (C_out, 1)          folded conv-bias + BN shift (f32)
    # up_ref:    (196, Hout*Wout)    one-hot nearest-neighbor selection matrix
    # o_ref:     (C_out, Hout*Wout)  NCHW-flattened, upsampled output block
    #
    # 1x1 conv == matmul, contracting C_in of both operands ("A @ B^T" form),
    # output (C_out, 196) so the spatial axis is the lane dimension.
    z = lax.dot_general(
        wt_ref[...], x_ref[...],
        dimension_numbers=(((1,), (1,)), ((), ())),
        preferred_element_type=jnp.float32)                    # (C_out, 196)
    # Folded BN shift + ReLU epilogue in f32 (VPU).
    z = jnp.maximum(z + shift_ref[...], 0.0)
    # Fused nearest-neighbor upsample: one-hot columns -> pure selection,
    # executed on the MXU, lane-dense (Hout*Wout) store.
    o_ref[...] = jnp.dot(z, up_ref[...],
                         preferred_element_type=jnp.float32).astype(o_ref.dtype)


def fuse_up(x, H, W, params, *, use_bf16=False):
    """x: (B, 196, C_in) float32 -> (B, C_out, H//2, W//2) float32.

    Intended to be called under jax.jit with H, W (and use_bf16) static so the
    parameter folding and the one-hot upsample matrix constant-fold.
    """
    B, N, Cin = x.shape
    assert N == 14 * 14, "FuseUp hard-codes a 14x14 token grid"

    w = params["w"]                # (C_in, C_out)  conv_project.weight (1x1)
    b = params["b"]                # (C_out,)       conv_project.bias
    gamma = params["gamma"]        # (C_out,)       bn.weight
    beta = params["beta"]          # (C_out,)       bn.bias
    mean = params["mean"]          # (C_out,)       bn.running_mean
    var = params["var"]            # (C_out,)       bn.running_var
    eps = 1e-5
    Cout = w.shape[1]
    Hout, Wout = H // 2, W // 2
    Q = Hout * Wout

    # Fold conv bias + inference BN into the weight (scale) and a shift vector
    # (pure parameter-time transform; removes a per-element vmul + one input).
    s = gamma / jnp.sqrt(var + eps)                            # (C_out,)
    wt = (w * s[None, :]).T                                    # (C_out, C_in)
    shift = ((b - mean) * s + beta).reshape(Cout, 1)           # (C_out, 1)

    # One-hot nearest-neighbor selection matrix (PyTorch 'nearest':
    # src = floor(dst * in / out)).  Constant for given (H, W).
    row_idx = (jnp.arange(Hout) * 14) // Hout                  # (Hout,)
    col_idx = (jnp.arange(Wout) * 14) // Wout                  # (Wout,)
    src = (row_idx[:, None] * 14 + col_idx[None, :]).reshape(1, Q)
    up = (jnp.arange(N)[:, None] == src).astype(jnp.float32)   # (196, Q)

    if use_bf16:
        # Halve HBM read traffic; accumulate + epilogue + output remain f32.
        x = x.astype(jnp.bfloat16)
        wt = wt.astype(jnp.bfloat16)

    out_bytes = B * Cout * Q * 4
    cost = pl.CostEstimate(
        flops=2 * B * Cout * N * (Cin + Q),
        transcendentals=0,
        bytes_accessed=(x.size * x.dtype.itemsize
                        + wt.size * wt.dtype.itemsize
                        + shift.size * 4 + up.size * 4 + out_bytes),
    )

    y = pl.pallas_call(
        _fuseup_kernel,
        out_shape=jax.ShapeDtypeStruct((B, Cout, Q), jnp.float32),
        grid=(B,),
        in_specs=[
            pl.BlockSpec((None, N, Cin), lambda bi: (bi, 0, 0)),   # x, per batch
            pl.BlockSpec((Cout, Cin),    lambda bi: (0, 0)),       # folded weight
            pl.BlockSpec((Cout, 1),      lambda bi: (0, 0)),       # shift
            pl.BlockSpec((N, Q),         lambda bi: (0, 0)),       # upsample one-hot
        ],
        out_specs=pl.BlockSpec((None, Cout, Q), lambda bi: (bi, 0, 0)),
        compiler_params=pltpu.CompilerParams(
            dimension_semantics=("parallel",)),
        cost_estimate=cost,
    )(x, wt, shift, up)

    # Contiguous reshape only -- the kernel output is already NCHW-ordered.
    return y.reshape(B, Cout, Hout, Wout)


def _reference(x, H, W, params):
    """Plain-JAX reference mirroring the PyTorch forward (silent check)."""
    eps = 1e-5
    B = x.shape[0]
    z = jnp.einsum("bnc,cd->bnd", x, params["w"]) + params["b"]
    z = (z - params["mean"]) / jnp.sqrt(params["var"] + eps) * params["gamma"] + params["beta"]
    z = jnp.maximum(z, 0.0)
    z = z.reshape(B, 14, 14, -1)
    Hout, Wout = H // 2, W // 2
    ri = (jnp.arange(Hout) * 14) // Hout
    ci = (jnp.arange(Wout) * 14) // Wout
    z = z[:, ri][:, :, ci]
    return jnp.transpose(z, (0, 3, 1, 2))


if __name__ == "__main__":
    B = 2
    in_channels = 32
    out_channels = 16
    N = 14 * 14
    H = W = 56                                       # output spatial = (28, 28)

    key = jax.random.PRNGKey(0)
    k_x, k_w, k_b, k_g, k_be, k_m, k_v = jax.random.split(key, 7)

    x = jax.random.normal(k_x, (B, N, in_channels), dtype=jnp.float32)
    params = {
        "w": jax.random.normal(k_w, (in_channels, out_channels), jnp.float32) * 0.1,
        "b": jax.random.normal(k_b, (out_channels,), jnp.float32) * 0.1,
        "gamma": 1.0 + 0.1 * jax.random.normal(k_g, (out_channels,), jnp.float32),
        "beta": 0.1 * jax.random.normal(k_be, (out_channels,), jnp.float32),
        "mean": 0.1 * jax.random.normal(k_m, (out_channels,), jnp.float32),
        "var": jnp.abs(jax.random.normal(k_v, (out_channels,), jnp.float32)) + 0.5,
    }

    ref = _reference(x, H, W, params)

    # Jit so parameter folding / one-hot construction constant-fold and the
    # pallas_call is the only runtime op.  H, W (and use_bf16) are static.
    fuse_up_jit = jax.jit(fuse_up, static_argnums=(1, 2),
                          static_argnames=("use_bf16",))

    # f32 path. Tolerance leaves headroom for the MXU's multi-pass f32 matmul
    # policy (the one-hot upsample matmul is exact under that decomposition).
    out = jax.block_until_ready(fuse_up_jit(x, H, W, params))
    assert out.shape == (B, out_channels, H // 2, W // 2), out.shape
    assert jnp.allclose(out, ref, atol=5e-3, rtol=5e-3), float(jnp.max(jnp.abs(out - ref)))

    # bf16-input path (bandwidth optimization); looser tolerance for bf16 operands.
    out_bf16 = jax.block_until_ready(fuse_up_jit(x, H, W, params, use_bf16=True))
    assert out_bf16.shape == (B, out_channels, H // 2, W // 2), out_bf16.shape
    assert jnp.allclose(out_bf16, ref, atol=3e-2, rtol=3e-2)

    print("KERNEL_OK")
</pallas_src>

<mosaic_0001>
module attributes {stable_mosaic.version = 11 : i64} {
  func.func @_fuseup_kernel(%arg0: i32, %arg1: memref<1x196x32xf32, #tpu.memory_space<vmem>>, %arg2: memref<16x32xf32, #tpu.memory_space<vmem>>, %arg3: memref<16x1xf32, #tpu.memory_space<vmem>>, %arg4: memref<196x784xf32, #tpu.memory_space<vmem>>, %arg5: memref<1x16x784xf32, #tpu.memory_space<vmem>>) attributes {dimension_semantics = [#tpu.dimension_semantics<parallel>], iteration_bounds = array<i64: 2>, scalar_prefetch = 0 : i64, scratch_operands = 0 : i64, tpu.core_type = #tpu.core_type<tc>, window_params = [{transform_indices = @transform_0, window_bounds = array<i64: 1, 196, 32>}, {pipeline_mode = #tpu.pipeline_mode<synchronous>, transform_indices = @transform_1, window_bounds = array<i64: 16, 32>}, {pipeline_mode = #tpu.pipeline_mode<synchronous>, transform_indices = @transform_2, window_bounds = array<i64: 16, 1>}, {pipeline_mode = #tpu.pipeline_mode<synchronous>, transform_indices = @transform_3, window_bounds = array<i64: 196, 784>}, {transform_indices = @transform_4, window_bounds = array<i64: 1, 16, 784>}]} {
    %c0 = arith.constant 0 : index
    %c0_0 = arith.constant 0 : index
    %0 = vector.load %arg2[%c0, %c0_0] : memref<16x32xf32, #tpu.memory_space<vmem>>, vector<16x32xf32>
    %c0_1 = arith.constant 0 : index
    %c0_2 = arith.constant 0 : index
    %c0_3 = arith.constant 0 : index
    %1 = vector.load %arg1[%c0_1, %c0_2, %c0_3] : memref<1x196x32xf32, #tpu.memory_space<vmem>>, vector<1x196x32xf32>
    %2 = vector.shape_cast %1 : vector<1x196x32xf32> to vector<196x32xf32>
    %cst = arith.constant dense<0.000000e+00> : vector<16x196xf32>
    %3 = tpu.matmul %0, %2, %cst {dimension_numbers = #tpu.dot_dimension_numbers<[1], [1], [0], [0], [0, 0, 1, 0], [], []>} : vector<16x32xf32>, vector<196x32xf32>, vector<16x196xf32> -> vector<16x196xf32>
    %c0_4 = arith.constant 0 : index
    %c0_5 = arith.constant 0 : index
    %4 = vector.load %arg3[%c0_4, %c0_5] : memref<16x1xf32, #tpu.memory_space<vmem>>, vector<16x1xf32>
    %5 = vector.broadcast %4 : vector<16x1xf32> to vector<16x196xf32>
    %6 = arith.addf %3, %5 : vector<16x196xf32>
    %cst_6 = arith.constant 0.000000e+00 : f32
    %7 = vector.broadcast %cst_6 : f32 to vector<16x196xf32>
    %8 = arith.maximumf %6, %7 : vector<16x196xf32>
    %c0_7 = arith.constant 0 : index
    %c0_8 = arith.constant 0 : index
    %9 = vector.load %arg4[%c0_7, %c0_8] : memref<196x784xf32, #tpu.memory_space<vmem>>, vector<196x784xf32>
    %cst_9 = arith.constant dense<0.000000e+00> : vector<16x784xf32>
    %10 = tpu.matmul %8, %9, %cst_9 {dimension_numbers = #tpu.dot_dimension_numbers<[1], [0], [0], [1], [0, 0, 1, 1], [], []>} : vector<16x196xf32>, vector<196x784xf32>, vector<16x784xf32> -> vector<16x784xf32>
    %c0_10 = arith.constant 0 : index
    %c0_11 = arith.constant 0 : index
    %c0_12 = arith.constant 0 : index
    %11 = vector.load %arg5[%c0_10, %c0_11, %c0_12] : memref<1x16x784xf32, #tpu.memory_space<vmem>>, vector<1x16x784xf32>
    %12 = vector.shape_cast %11 : vector<1x16x784xf32> to vector<16x784xf32>
    %13 = vector.shape_cast %10 : vector<16x784xf32> to vector<1x16x784xf32>
    tpu.vector_store %arg5[%c0_10, %c0_11, %c0_12], %13 {strides = array<i32>} : memref<1x16x784xf32, #tpu.memory_space<vmem>>, vector<1x16x784xf32>,
    return
  }
  func.func @transform_0(%arg0: i32) -> (i32, i32, i32) {
    %c0_i32 = arith.constant 0 : i32
    %c0_i32_0 = arith.constant 0 : i32
    %c0_i32_1 = arith.constant 0 : i32
    return %arg0, %c0_i32, %c0_i32_0 : i32, i32, i32
  }
  func.func @transform_1(%arg0: i32) -> (i32, i32) {
    %c0_i32 = arith.constant 0 : i32
    %c0_i32_0 = arith.constant 0 : i32
    %c0_i32_1 = arith.constant 0 : i32
    return %c0_i32, %c0_i32_0 : i32, i32
  }
  func.func @transform_2(%arg0: i32) -> (i32, i32) {
    %c0_i32 = arith.constant 0 : i32
    %c0_i32_0 = arith.constant 0 : i32
    %c0_i32_1 = arith.constant 0 : i32
    return %c0_i32, %c0_i32_0 : i32, i32
  }
  func.func @transform_3(%arg0: i32) -> (i32, i32) {
    %c0_i32 = arith.constant 0 : i32
    %c0_i32_0 = arith.constant 0 : i32
    %c0_i32_1 = arith.constant 0 : i32
    return %c0_i32, %c0_i32_0 : i32, i32
  }
  func.func @transform_4(%arg0: i32) -> (i32, i32, i32) {
    %c0_i32 = arith.constant 0 : i32
    %c0_i32_0 = arith.constant 0 : i32
    %c0_i32_1 = arith.constant 0 : i32
    return %arg0, %c0_i32, %c0_i32_0 : i32, i32, i32
  }
}

</mosaic_0001>

<bundles_post_ra>
// kernel: fuse_up.1
= control target key start
LH: loop header
LB: loop body
LE: loop exit
PB: predicated region body
PF: predicated region fallthrough
CT: control target
= control target key end

     0   :  { %s1079_s15 = smov 0   ;;  %s1795_s0 = inlined_call_operand.vmem [shape: f32[2,196,32], index: 0, kind: input, shape index: {}]   ;;  %s1796_s1 = inlined_call_operand.vmem [shape: f32[16,32], index: 1, kind: input, shape index: {}]   ;;  %s1797_s2 = inlined_call_operand.vmem [shape: f32[16,1], index: 2, kind: input, shape index: {}]   ;;  %s1798_s3 = inlined_call_operand.vmem [shape: f32[196,784], index: 3, kind: input, shape index: {}]   ;;  %s1799_s4 = inlined_call_operand.vmem [shape: f32[2,16,784], index: 4, kind: output, shape index: {}]  }
   0x1 LB: > { %s965_s16 = sadd.s32 4294967295, %s1051_s15   ;;  %p969_p0 = scmp.ge.s32.totalorder %s1051_s15, 1  ;;  %s1051_s15 = sphi %s1079_s15, %s14_s15  }
   0x2   : > { %p162_p1 = scmp.lt.s32.totalorder %s1051_s15, 3 }
   0x4   : > { %p163_p2 = pnand %p969_p0, %p162_p1 }
   0x5   : > { %p188_p3 = scmp.lt.s32.totalorder (!%p163_p2), %s965_s16, 1 }
   0x6   : > { %166 = sbr.rel (%p163_p2) target bundleno = 420 (0x1a4), region = 36 }
   0xb   : > { %s1801_s16 = smov (!%p188_p3, %s965_s16), 1  ;;  %vm237_vm0 = vcmask 261120   ;;  %v1053_v13 = vmov 0   ;;  %v225_v15 = vld [vmem:[%s1797_s2] sm:$0xff]  ;;  %v226_v20 = vld [vmem:[%s1797_s2 + $0x8] sm:$0xff]  ;;  %vm551_vm1 = vcmask 1043456  }
   0xc   : > { %s1033_s17 = smul.u32 200, %s1801_s16  ;;  %1044 = vset.pattern.permute.xlu0 %v1053_v13  ;;  %v1141_v22 = vld [vmem:[%s1796_s1] sm:$0xff]  ;;  %v530_v25 = vld [vmem:[%s1798_s3 + $0x508] sm:$0xff]  ;;  %v523_v28 = vld [vmem:[%s1798_s3 + $0x4d0] sm:$0xff]  ;;  %vm544_vm2 = vcmask 556032   ;;  %vm901_vm3 = vcmask 130048  }
   0xd   : > { %229 = vperm.xlu0 %1044, %v225_v15   ;;  %v537_v24 = vld [vmem:[%s1798_s3 + $0x540] sm:$0xf]  ;;  %v1159_v27 = vld [vmem:[%s1796_s1 + $0x8] sm:$0xff]  ;;  %v476_v30 = vld [vmem:[%s1798_s3 + $0x358] sm:$0xff]  ;;  %s1034_s21 = smul.u32 112, %s1801_s16 }
   0xe   : > { %s1093_s20 = scalar_lea.vmem %s1795_s0, %s1033_s17  ;;  %1001 = vmatpush.msk.msra.mxu3 %vm551_vm1, %v537_v24  ;;  %v474_v29 = vld [vmem:[%s1798_s3 + $0x348] sm:$0xff]  ;;  %v467_v31 = vld [vmem:[%s1798_s3 + $0x310] sm:$0xff]  ;;  %v516_v32 = vld [vmem:[%s1798_s3 + $0x498] sm:$0xff] }
   0xf   : > { %v215_v0 = vld [vmem:[%s1093_s20 + $0x78] sm:$0xff]  ;;  %v224_v1 = vld [vmem:[%s1093_s20 + $0xc0] sm:$0xf]  ;;  %v214_v2 = vld [vmem:[%s1093_s20 + $0x70] sm:$0xff]  ;;  %573 = vmatpush.msra.mxu2 %v474_v29  ;;  %s1776_s24 = scalar_lea.vmem %s1799_s4, %s1034_s21 }
  0x10   : > { %972 = vmatpush.xpose.msk.msra.mxu0 %vm237_vm0, %v215_v0  ;;  %990 = vmatpush.xpose.msk.msra.mxu1 %vm237_vm0, %v224_v1  ;;  %v223_v3 = vld [vmem:[%s1093_s20 + $0xb8] sm:$0xff]  ;;  %v213_v4 = vld [vmem:[%s1093_s20 + $0x68] sm:$0xff]  ;;  %v222_v5 = vld [vmem:[%s1093_s20 + $0xb0] sm:$0xff] }
  0x11   : > { %v212_v6 = vld [vmem:[%s1093_s20 + $0x60] sm:$0xff]  ;;  %v221_v7 = vld [vmem:[%s1093_s20 + $0xa8] sm:$0xff]  ;;  %v211_v8 = vld [vmem:[%s1093_s20 + $0x58] sm:$0xff]  ;;  %604 = vmatpush.msra.mxu3 %v530_v25  ;;  %574 = vmatpush.msra.mxu2 %v467_v31 }
  0x12   : > { %v220_v9 = vld [vmem:[%s1093_s20 + $0xa0] sm:$0xff]  ;;  %v210_v10 = vld [vmem:[%s1093_s20 + $0x50] sm:$0xff]  ;;  %v219_v11 = vld [vmem:[%s1093_s20 + $0x98] sm:$0xff] }
  0x13   : > { %v209_v12 = vld [vmem:[%s1093_s20 + $0x48] sm:$0xff]  ;;  %v218_v14 = vld [vmem:[%s1093_s20 + $0x90] sm:$0xff]  ;;  %v208_v16 = vld [vmem:[%s1093_s20 + $0x40] sm:$0xff]  ;;  %605 = vmatpush.msra.mxu3 %v523_v28 }
  0x14   : > { %973 = vmatpush.xpose.msk.msra.mxu0 %vm237_vm0, %v214_v2  ;;  %991 = vmatpush.xpose.msk.msra.mxu1 %vm237_vm0, %v223_v3  ;;  %v217_v17 = vld [vmem:[%s1093_s20 + $0x88] sm:$0xff]  ;;  %v207_v18 = vld [vmem:[%s1093_s20 + $0x38] sm:$0xff]  ;;  %v216_v19 = vld [vmem:[%s1093_s20 + $0x80] sm:$0xff] }
  0x15   : > { %v206_v21 = vld [vmem:[%s1093_s20 + $0x30] sm:$0xff]  ;;  %234 = vperm.xlu0 %1044, %v226_v20   ;;  %v205_v23 = vld [vmem:[%s1093_s20 + $0x28] sm:$0xff]  ;;  %v204_v26 = vld [vmem:[%s1093_s20 + $0x20] sm:$0xff]  ;;  %606 = vmatpush.msra.mxu3 %v516_v32 }
  0x16   : > { %v469_v33 = vld [vmem:[%s1798_s3 + $0x320] sm:$0xff]  ;;  %v203_v34 = vld [vmem:[%s1093_s20 + $0x18] sm:$0xff]  ;;  %v462_v37 = vld [vmem:[%s1798_s3 + $0x2e8] sm:$0xff] }
  0x17   : > { %v460_v35 = vld [vmem:[%s1798_s3 + $0x2d8] sm:$0xff]  ;;  %v509_v36 = vld [vmem:[%s1798_s3 + $0x460] sm:$0xff]  ;;  %v502_v39 = vld [vmem:[%s1798_s3 + $0x428] sm:$0xff] }
  0x18   : > { %974 = vmatpush.xpose.msk.msra.mxu0 %vm237_vm0, %v213_v4  ;;  %992 = vmatpush.xpose.msk.msra.mxu1 %vm237_vm0, %v222_v5  ;;  %v453_v38 = vld [vmem:[%s1798_s3 + $0x2a0] sm:$0xff]  ;;  %v455_v40 = vld [vmem:[%s1798_s3 + $0x2b0] sm:$0xff]  ;;  %v446_v42 = vld [vmem:[%s1798_s3 + $0x268] sm:$0xff] }
  0x19   : > { %575 = vmatpush.msra.mxu2 %v460_v35  ;;  %v202_v41 = vld [vmem:[%s1093_s20 + $0x10] sm:$0xff]  ;;  %607 = vmatpush.msra.mxu3 %v509_v36  ;;  %v448_v44 = vld [vmem:[%s1798_s3 + $0x278] sm:$0xff]  ;;  %v441_v47 = vld [vmem:[%s1798_s3 + $0x240] sm:$0xff] }
  0x1a   : > { %v495_v43 = vld [vmem:[%s1798_s3 + $0x3f0] sm:$0xff]  ;;  %v488_v46 = vld [vmem:[%s1798_s3 + $0x3b8] sm:$0xff]  ;;  %v201_v48 = vld [vmem:[%s1093_s20 + $0x8] sm:$0xff] }
  0x1b   : > { %576 = vmatpush.msra.mxu2 %v453_v38  ;;  %608 = vmatpush.msra.mxu3 %v502_v39  ;;  %v439_v45 = vld [vmem:[%s1798_s3 + $0x230] sm:$0xff]  ;;  %v432_v49 = vld [vmem:[%s1798_s3 + $0x1f8] sm:$0xff]  ;;  %v481_v50 = vld [vmem:[%s1798_s3 + $0x380] sm:$0xff] }
  0x1c   : > { %975 = vmatpush.xpose.msk.msra.mxu0 %vm237_vm0, %v212_v6  ;;  %993 = vmatpush.xpose.msk.msra.mxu1 %vm237_vm0, %v221_v7  ;;  %v434_v51 = vld [vmem:[%s1798_s3 + $0x208] sm:$0xff]  ;;  %v475_v52 = vld [vmem:[%s1798_s3 + $0x350] sm:$0xff]  ;;  %v425_v53 = vld [vmem:[%s1798_s3 + $0x1c0] sm:$0xff] }
  0x1d   : > { %577 = vmatpush.msra.mxu2 %v446_v42  ;;  %609 = vmatpush.msra.mxu3 %v495_v43  ;;  %v427_v54 = vld [vmem:[%s1798_s3 + $0x1d0] sm:$0xff]  ;;  %v200_v55 = vld [vmem:[%s1093_s20] sm:$0xff]  ;;  %v468_v56 = vld [vmem:[%s1798_s3 + $0x318] sm:$0xff] }
  0x1e   : > { %v540_v57 = vld [vmem:[%s1798_s3 + $0x558] sm:$0xf]  ;;  %v418_v58 = vld [vmem:[%s1798_s3 + $0x188] sm:$0xff]  ;;  %v461_v59 = vld [vmem:[%s1798_s3 + $0x2e0] sm:$0xff] }
  0x1f   : > { %578 = vmatpush.msra.mxu2 %v439_v45  ;;  %610 = vmatpush.msra.mxu3 %v488_v46  ;;  %v420_v60 = vld [vmem:[%s1798_s3 + $0x198] sm:$0xff]  ;;  %v411_v61 = vld [vmem:[%s1798_s3 + $0x150] sm:$0xff]  ;;  %v533_v62 = vld [vmem:[%s1798_s3 + $0x520] sm:$0xff] }
  0x20   : > { %976 = vmatpush.xpose.msk.msra.mxu0 %vm237_vm0, %v211_v8  ;;  %994 = vmatpush.xpose.msk.msra.mxu1 %vm237_vm0, %v220_v9  ;;  %v454_v63 = vld [vmem:[%s1798_s3 + $0x2a8] sm:$0xff]  ;;  %v413_v0 = vld [vmem:[%s1798_s3 + $0x160] sm:$0xff]  ;;  %v404_v1 = vld [vmem:[%s1798_s3 + $0x118] sm:$0xff] }
  0x21   : > { %579 = vmatpush.msra.mxu2 %v432_v49  ;;  %611 = vmatpush.msra.mxu3 %v481_v50  ;;  %v526_v2 = vld [vmem:[%s1798_s3 + $0x4e8] sm:$0xff]  ;;  %v447_v3 = vld [vmem:[%s1798_s3 + $0x270] sm:$0xff]  ;;  %v397_v5 = vld [vmem:[%s1798_s3 + $0xe0] sm:$0xff] }
  0x22   : > { %v406_v4 = vld [vmem:[%s1798_s3 + $0x128] sm:$0xff]  ;;  %v519_v6 = vld [vmem:[%s1798_s3 + $0x4b0] sm:$0xff]  ;;  %v440_v7 = vld [vmem:[%s1798_s3 + $0x238] sm:$0xff] }
  0x23   : > { %619 = vmatpush.msrb.mxu3 %v475_v52  ;;  %580 = vmatpush.msra.mxu2 %v425_v53  ;;  %v399_v8 = vld [vmem:[%s1798_s3 + $0xf0] sm:$0xff]  ;;  %v390_v9 = vld [vmem:[%s1798_s3 + $0xa8] sm:$0xff]  ;;  %v505_v13 = vld [vmem:[%s1798_s3 + $0x440] sm:$0xff] }
  0x24   : > { %977 = vmatpush.xpose.msk.msra.mxu0 %vm237_vm0, %v210_v10  ;;  %995 = vmatpush.xpose.msk.msra.mxu1 %vm237_vm0, %v219_v11  ;;  %v512_v10 = vld [vmem:[%s1798_s3 + $0x478] sm:$0xff]  ;;  %v433_v11 = vld [vmem:[%s1798_s3 + $0x200] sm:$0xff]  ;;  %v383_v15 = vld [vmem:[%s1798_s3 + $0x70] sm:$0xff] }
  0x25   : > { %620 = vmatpush.msrb.mxu3 %v468_v56  ;;  %581 = vmatpush.msra.mxu2 %v418_v58  ;;  %v484_v20 = vld [vmem:[%s1798_s3 + $0x398] sm:$0xff]  ;;  %v391_v25 = vld [vmem:[%s1798_s3 + $0xb0] sm:$0xff]  ;;  %v458_v28 = vld [vmem:[%s1798_s3 + $0x2c8] sm:$0xff] }
  0x26   : > { %v472_v24 = vld [vmem:[%s1798_s3 + $0x338] sm:$0xff]  ;;  %v451_v29 = vld [vmem:[%s1798_s3 + $0x290] sm:$0xff]  ;;  %v437_v35 = vld [vmem:[%s1798_s3 + $0x220] sm:$0xff] }
  0x27   : > { %621 = vmatpush.msrb.mxu3 %v461_v59  ;;  %582 = vmatpush.msra.mxu2 %v411_v61  ;;  %v444_v31 = vld [vmem:[%s1798_s3 + $0x258] sm:$0xff]  ;;  %v369_v36 = vld [vmem:[%s1798_s3] sm:$0xff]  ;;  %v538_v38 = vld [vmem:[%s1798_s3 + $0x548] sm:$0xf] }
  0x28   : > { %978 = vmatpush.xpose.msk.msra.mxu0 %vm237_vm0, %v209_v12  ;;  %996 = vmatpush.xpose.msk.msra.mxu1 %vm237_vm0, %v218_v14  ;;  %v392_v12 = vld [vmem:[%s1798_s3 + $0xb8] sm:$0xff]  ;;  %v426_v14 = vld [vmem:[%s1798_s3 + $0x1c8] sm:$0xff]  ;;  %v371_v39 = vld [vmem:[%s1798_s3 + $0x10] sm:$0xff] }
  0x29   : > { %622 = vmatpush.msrb.mxu3 %v454_v63  ;;  %583 = vmatpush.msra.mxu2 %v404_v1  ;;  %v376_v32 = vld [vmem:[%s1798_s3 + $0x38] sm:$0xff]  ;;  %v531_v42 = vld [vmem:[%s1798_s3 + $0x510] sm:$0xff]  ;;  %v409_v49 = vld [vmem:[%s1798_s3 + $0x140] sm:$0xff] }
  0x2a   : > { %v423_v43 = vld [vmem:[%s1798_s3 + $0x1b0] sm:$0xff]  ;;  %v524_v45 = vld [vmem:[%s1798_s3 + $0x4d8] sm:$0xff]  ;;  %v457_v50 = vld [vmem:[%s1798_s3 + $0x2c0] sm:$0xff] }
  0x2b   : > { %623 = vmatpush.msrb.mxu3 %v447_v3  ;;  %584 = vmatpush.msra.mxu2 %v397_v5  ;;  %v416_v46 = vld [vmem:[%s1798_s3 + $0x178] sm:$0xff]  ;;  %v402_v52 = vld [vmem:[%s1798_s3 + $0x108] sm:$0xff]  ;;  %v443_v56 = vld [vmem:[%s1798_s3 + $0x250] sm:$0xff] }
  0x2c   : > { %979 = vmatpush.xpose.msk.msra.mxu0 %vm237_vm0, %v208_v16  ;;  %997 = vmatpush.xpose.msk.msra.mxu1 %vm237_vm0, %v217_v17  ;;  %v498_v16 = vld [vmem:[%s1798_s3 + $0x408] sm:$0xff]  ;;  %v419_v17 = vld [vmem:[%s1798_s3 + $0x190] sm:$0xff]  ;;  %v388_v58 = vld [vmem:[%s1798_s3 + $0x98] sm:$0xff] }
  0x2d   : > { %624 = vmatpush.msrb.mxu3 %v440_v7  ;;  %585 = vmatpush.msra.mxu2 %v390_v9  ;;  %v450_v53 = vld [vmem:[%s1798_s3 + $0x288] sm:$0xff]  ;;  %v436_v59 = vld [vmem:[%s1798_s3 + $0x218] sm:$0xff]  ;;  %v489_v61 = vld [vmem:[%s1798_s3 + $0x3c0] sm:$0xff] }
  0x2e   : > { %v429_v63 = vld [vmem:[%s1798_s3 + $0x1e0] sm:$0xff]  ;;  %v374_v1 = vld [vmem:[%s1798_s3 + $0x28] sm:$0xff]  ;;  %v415_v7 = vld [vmem:[%s1798_s3 + $0x170] sm:$0xff] }
  0x2f   : > { %625 = vmatpush.msrb.mxu3 %v433_v11  ;;  %586 = vmatpush.msra.mxu2 %v383_v15  ;;  %v422_v3 = vld [vmem:[%s1798_s3 + $0x1a8] sm:$0xff]  ;;  %v408_v9 = vld [vmem:[%s1798_s3 + $0x138] sm:$0xff]  ;;  %v463_v11 = vld [vmem:[%s1798_s3 + $0x2f0] sm:$0xff] }
  0x30   : > { %980 = vmatpush.xpose.msk.msra.mxu0 %vm237_vm0, %v207_v18  ;;  %998 = vmatpush.xpose.msk.msra.mxu1 %vm237_vm0, %v216_v19  ;;  %v491_v18 = vld [vmem:[%s1798_s3 + $0x3d0] sm:$0xff]  ;;  %v412_v19 = vld [vmem:[%s1798_s3 + $0x158] sm:$0xff] }
  0x31   : > { %626 = vmatpush.msrb.mxu3 %v426_v14  ;;  %587 = vmatpush.msra.mxu2 %v376_v32  ;;  %v456_v15 = vld [vmem:[%s1798_s3 + $0x2b8] sm:$0xff] }
  0x33   : > { %999 = vmatmul.msk.f32.vlgmr.msra.gmra.mxu1 %vm237_vm0, %v1141_v22  ;;  %627 = vmatpush.msrb.mxu3 %v419_v17 }
  0x34   : > { %981 = vmatpush.xpose.msk.msra.mxu0 %vm237_vm0, %v206_v21  ;;  %665 = vmatpush.msrb.mxu1 %v476_v30  ;;  %v405_v21 = vld [vmem:[%s1798_s3 + $0x120] sm:$0xff] }
  0x35   : > { %628 = vmatpush.msrb.mxu3 %v412_v19  ;;  %v385_v30 = vld [vmem:[%s1798_s3 + $0x80] sm:$0xff]  ;;  %588 = vmatpush.msra.mxu2 %v369_v36  ;;  %v387_v19 = vld [vmem:[%s1798_s3 + $0x90] sm:$0xff] }
  0x36   : > { %666 = vmatpush.msrb.mxu1 %v469_v33  ;;  %v377_v33 = vld [vmem:[%s1798_s3 + $0x40] sm:$0xff]  ;;  %v1564_v36 = vld [vmem:[%s1798_s3 + $0x570] sm:$0xf] }
  0x37   : > { %629 = vmatpush.msrb.mxu3 %v405_v21  ;;  %1004 = vmatpush.msk.msrb.mxu2 %vm551_vm1, %v538_v38  ;;  %v380_v21 = vld [vmem:[%s1798_s3 + $0x58] sm:$0xff]  ;;  %v525_v38 = vld [vmem:[%s1798_s3 + $0x4e0] sm:$0xff] }
  0x38   : > { %982 = vmatpush.xpose.msk.msra.mxu0 %vm237_vm0, %v205_v23  ;;  %667 = vmatpush.msrb.mxu1 %v462_v37  ;;  %v398_v23 = vld [vmem:[%s1798_s3 + $0xe8] sm:$0xff] }
  0x39   : > { %630 = vmatpush.msrb.mxu3 %v398_v23  ;;  %v370_v37 = vld [vmem:[%s1798_s3 + $0x8] sm:$0xff]  ;;  %650 = vmatpush.msrb.mxu2 %v531_v42  ;;  %v373_v23 = vld [vmem:[%s1798_s3 + $0x20] sm:$0xff] }
  0x3a   : > { %668 = vmatpush.msrb.mxu1 %v455_v40  ;;  %v430_v40 = vld [vmem:[%s1798_s3 + $0x1e8] sm:$0xff] }
  0x3b   : > { %1000 = vmatmul.msk.f32.gmra.mxu1 %vm237_vm0, %v1159_v27  ;;  %631 = vmatpush.msrb.mxu3 %v391_v25  ;;  %v421_v25 = vld [vmem:[%s1798_s3 + $0x1a0] sm:$0xff] }
  0x3c   : > { %983 = vmatpush.xpose.msk.msra.mxu0 %vm237_vm0, %v204_v26  ;;  %669 = vmatpush.msrb.mxu1 %v448_v44  ;;  %v465_v26 = vld [vmem:[%s1798_s3 + $0x300] sm:$0xff]  ;;  %v471_v44 = vld [vmem:[%s1798_s3 + $0x330] sm:$0xff] }
  0x3d   : > { %651 = vmatpush.msrb.mxu2 %v524_v45 }
  0x3e   : > { %670 = vmatpush.msrb.mxu1 %v441_v47  ;;  %v464_v47 = vld [vmem:[%s1798_s3 + $0x2f8] sm:$0xff] }
  0x40   : > { %984 = vmatpush.xpose.msk.msra.mxu0 %vm237_vm0, %v203_v34  ;;  %671 = vmatpush.msrb.mxu1 %v434_v51  ;;  %v378_v34 = vld [vmem:[%s1798_s3 + $0x48] sm:$0xff] }
  0x41   : > { %v510_v51 = vld [vmem:[%s1798_s3 + $0x468] sm:$0xff] }
  0x42   : > { %672 = vmatpush.msrb.mxu1 %v427_v54  ;;  %v503_v54 = vld [vmem:[%s1798_s3 + $0x430] sm:$0xff] }
  0x44   : > { %985 = vmatpush.xpose.msk.msra.mxu0 %vm237_vm0, %v202_v41  ;;  %673 = vmatpush.msrb.mxu1 %v420_v60  ;;  %v478_v41 = vld [vmem:[%s1798_s3 + $0x368] sm:$0xff] }
  0x46   : > { %674 = vmatpush.msrb.mxu1 %v413_v0  ;;  %v482_v0 = vld [vmem:[%s1798_s3 + $0x388] sm:$0xff] }
  0x48   : > { %986 = vmatpush.xpose.msk.msra.mxu0 %vm237_vm0, %v201_v48  ;;  %675 = vmatpush.msrb.mxu1 %v406_v4  ;;  %v517_v48 = vld [vmem:[%s1798_s3 + $0x4a0] sm:$0xff] }
  0x49   : > { %652 = vmatpush.msrb.mxu2 %v517_v48  ;;  %v504_v48 = vld [vmem:[%s1798_s3 + $0x438] sm:$0xff] }
  0x4a   : > { %676 = vmatpush.msrb.mxu1 %v399_v8  ;;  %v470_v8 = vld [vmem:[%s1798_s3 + $0x328] sm:$0xff] }
  0x4b   : > { %653 = vmatpush.msrb.mxu2 %v510_v51  ;;  %v497_v51 = vld [vmem:[%s1798_s3 + $0x400] sm:$0xff] }
  0x4c   : > { %987 = vmatpush.xpose.msk.msra.mxu0 %vm237_vm0, %v200_v55  ;;  %677 = vmatpush.msrb.mxu1 %v392_v12  ;;  %v395_v55 = vld [vmem:[%s1798_s3 + $0xd0] sm:$0xff]  ;;  %v401_v12 = vld [vmem:[%s1798_s3 + $0x100] sm:$0xff] }
  0x4d   : > { %654 = vmatpush.msrb.mxu2 %v503_v54  ;;  %v490_v54 = vld [vmem:[%s1798_s3 + $0x3c8] sm:$0xff] }
  0x4e   : > { %678 = vmatpush.msrb.mxu1 %v385_v30  ;;  %v393_v30 = vld [vmem:[%s1798_s3 + $0xc0] sm:$0xff] }
  0x4f   : > { %988 = vmatmul.msk.f32.vlgmr.msra.gmra.mxu0 %vm237_vm0, %v1141_v22  ;;  %v479_v22 = vld [vmem:[%s1798_s3 + $0x370] sm:$0xff] }
  0x50   : > { %1010 = vmatpush.msk.msrb.mxu0 %vm551_vm1, %v540_v57  ;;  %679 = vmatpush.msrb.mxu1 %v378_v34  ;;  %v496_v57 = vld [vmem:[%s1798_s3 + $0x3f8] sm:$0xff]  ;;  %v386_v34 = vld [vmem:[%s1798_s3 + $0x88] sm:$0xff] }
  0x51   : > { %655 = vmatpush.msrb.mxu2 %v496_v57  ;;  %v541_v57 = vld [vmem:[%s1798_s3 + $0x560] sm:$0xf] }
  0x52   : > { %742 = vmatpush.msrb.mxu0 %v533_v62  ;;  %680 = vmatpush.msrb.mxu1 %v371_v39  ;;  %v381_v62 = vld [vmem:[%s1798_s3 + $0x60] sm:$0xff]  ;;  %v1578_v39 = vld [vmem:[%s1798_s3 + $0x538] sm:$0xff] }
  0x53   : > { %656 = vmatpush.msrb.mxu2 %v489_v61  ;;  %v507_v61 = vld [vmem:[%s1798_s3 + $0x450] sm:$0xff] }
  0x54   : > { %743 = vmatpush.msrb.mxu0 %v526_v2  ;;  %757 = vmatpush.msra.mxu1 %v478_v41  ;;  %v372_v41 = vld [vmem:[%s1798_s3 + $0x18] sm:$0xff] }
  0x55   : > { %657 = vmatpush.msrb.mxu2 %v482_v0  ;;  %v500_v0 = vld [vmem:[%s1798_s3 + $0x418] sm:$0xff] }
  0x56   : > { %744 = vmatpush.msrb.mxu0 %v519_v6  ;;  %758 = vmatpush.msra.mxu1 %v471_v44  ;;  %v477_v6 = vld [vmem:[%s1798_s3 + $0x360] sm:$0xff]  ;;  %v542_v44 = vld [vmem:[%s1798_s3 + $0x568] sm:$0xf] }
  0x57   : > { %989 = vmatmul.msk.f32.gmra.mxu0 %vm237_vm0, %v1159_v27  ;;  %v384_v27 = vld [vmem:[%s1798_s3 + $0x78] sm:$0xff] }
  0x58   : > { %745 = vmatpush.msrb.mxu0 %v512_v10  ;;  %632 = vmatpush.msrb.mxu3 %v384_v27  ;;  %v407_v27 = vld [vmem:[%s1798_s3 + $0x130] sm:$0xff] }
  0x59   : > { %759 = vmatpush.msra.mxu1 %v464_v47  ;;  %v535_v47 = vld [vmem:[%s1798_s3 + $0x530] sm:$0xff] }
  0x5a   : > { %746 = vmatpush.msrb.mxu0 %v505_v13  ;;  %633 = vmatpush.msrb.mxu3 %v377_v33  ;;  %v539_v33 = vld [vmem:[%s1798_s3 + $0x550] sm:$0xf] }
  0x5b   : > { %760 = vmatpush.msra.mxu1 %v457_v50  ;;  %v528_v50 = vld [vmem:[%s1798_s3 + $0x4f8] sm:$0xff] }
  0x5c   : > { %747 = vmatpush.msrb.mxu0 %v498_v16  ;;  %634 = vmatpush.msrb.mxu3 %v370_v37  ;;  %v394_v16 = vld [vmem:[%s1798_s3 + $0xc8] sm:$0xff]  ;;  %v379_v37 = vld [vmem:[%s1798_s3 + $0x50] sm:$0xff] }
  0x5d   : > { %761 = vmatpush.msra.mxu1 %v450_v53  ;;  %v521_v53 = vld [vmem:[%s1798_s3 + $0x4c0] sm:$0xff] }
  0x5e   : > { %748 = vmatpush.msrb.mxu0 %v491_v18  ;;  %v449_v18 = vld [vmem:[%s1798_s3 + $0x280] sm:$0xff] }
  0x5f   : > { %762 = vmatpush.msra.mxu1 %v443_v56  ;;  %v483_v56 = vld [vmem:[%s1798_s3 + $0x390] sm:$0xff] }
  0x60   : > { %749 = vmatpush.msrb.mxu0 %v484_v20  ;;  %v442_v20 = vld [vmem:[%s1798_s3 + $0x248] sm:$0xff] }
  0x61   : > { %763 = vmatpush.msra.mxu1 %v436_v59  ;;  %v508_v59 = vld [vmem:[%s1798_s3 + $0x458] sm:$0xff] }
  0x62   : > { %803 = vmatpush.msra.mxu0 %v479_v22  ;;  %v435_v22 = vld [vmem:[%s1798_s3 + $0x210] sm:$0xff] }
  0x63   : > { %764 = vmatpush.msra.mxu1 %v429_v63  ;;  %v527_v63 = vld [vmem:[%s1798_s3 + $0x4f0] sm:$0xff] }
  0x64   : > { %804 = vmatpush.msra.mxu0 %v472_v24  ;;  %v428_v24 = vld [vmem:[%s1798_s3 + $0x1d8] sm:$0xff] }
  0x65   : > { %765 = vmatpush.msra.mxu1 %v422_v3  ;;  %v513_v3 = vld [vmem:[%s1798_s3 + $0x480] sm:$0xff] }
  0x66   : > { %805 = vmatpush.msra.mxu0 %v465_v26  ;;  %v414_v26 = vld [vmem:[%s1798_s3 + $0x168] sm:$0xff] }
  0x67   : > { %766 = vmatpush.msra.mxu1 %v415_v7  ;;  %v506_v7 = vld [vmem:[%s1798_s3 + $0x448] sm:$0xff] }
  0x68   : > { %806 = vmatpush.msra.mxu0 %v458_v28  ;;  %v400_v28 = vld [vmem:[%s1798_s3 + $0xf8] sm:$0xff] }
  0x69   : > { %767 = vmatpush.msra.mxu1 %v408_v9  ;;  %v499_v9 = vld [vmem:[%s1798_s3 + $0x410] sm:$0xff] }
  0x6a   : > { %807 = vmatpush.msra.mxu0 %v451_v29 }
  0x6b   : > { %768 = vmatpush.msra.mxu1 %v401_v12  ;;  %v480_v12 = vld [vmem:[%s1798_s3 + $0x378] sm:$0xff] }
  0x6c   : > { %808 = vmatpush.msra.mxu0 %v444_v31 }
  0x6d   : > { %769 = vmatpush.msra.mxu1 %v394_v16  ;;  %v452_v16 = vld [vmem:[%s1798_s3 + $0x298] sm:$0xff] }
  0x6e   : > { %809 = vmatpush.msra.mxu0 %v437_v35  ;;  %v532_v35 = vld [vmem:[%s1798_s3 + $0x518] sm:$0xff] }
  0x6f   : > { %770 = vmatpush.msra.mxu1 %v387_v19  ;;  %v438_v19 = vld [vmem:[%s1798_s3 + $0x228] sm:$0xff] }
  0x70   : > { %810 = vmatpush.msra.mxu0 %v430_v40 }
  0x71   : > { %771 = vmatpush.msra.mxu1 %v380_v21  ;;  %v424_v21 = vld [vmem:[%s1798_s3 + $0x1b8] sm:$0xff] }
  0x72   : > { %811 = vmatpush.msra.mxu0 %v423_v43  ;;  %v518_v43 = vld [vmem:[%s1798_s3 + $0x4a8] sm:$0xff] }
  0x73   : > { %772 = vmatpush.msra.mxu1 %v373_v23  ;;  %v410_v23 = vld [vmem:[%s1798_s3 + $0x148] sm:$0xff] }
  0x74   : > { %812 = vmatpush.msra.mxu0 %v416_v46  ;;  %v511_v46 = vld [vmem:[%s1798_s3 + $0x470] sm:$0xff] }
  0x76   : > { %813 = vmatpush.msra.mxu0 %v409_v49  ;;  %v1609_v49 = vld [vmem:[%s1798_s3 + $0x500] sm:$0xff] }
  0x78   : > { %814 = vmatpush.msra.mxu0 %v402_v52  ;;  %v1622_v52 = vld [vmem:[%s1798_s3 + $0x4c8] sm:$0xff] }
  0x7a   : > { %815 = vmatpush.msra.mxu0 %v395_v55  ;;  %v515_v55 = vld [vmem:[%s1798_s3 + $0x490] sm:$0xff] }
  0x7c   : > { %816 = vmatpush.msra.mxu0 %v388_v58  ;;  %v514_v58 = vld [vmem:[%s1798_s3 + $0x488] sm:$0xff] }
  0x7e   : > { %817 = vmatpush.msra.mxu0 %v381_v62  ;;  %v501_v62 = vld [vmem:[%s1798_s3 + $0x420] sm:$0xff] }
  0x7f   : > { %v1454_v60 = vpop.permute.xlu0 %229 }
  0x80   : > { %818 = vmatpush.msra.mxu0 %v374_v1  ;;  %v494_v1 = vld [vmem:[%s1798_s3 + $0x3e8] sm:$0xff] }
  0x87   : > { %v235_v10 = vpop.permute.xlu0 %234 }
  0xb0   : > { %v359_v2 = vpop.f32.mrf.mxu1 }
  0xb1   : > { %v360_v4 = vadd.f32 %v359_v2, %v1454_v60  ;;  %v520_v2 = vld [vmem:[%s1798_s3 + $0x4b8] sm:$0xff] }
  0xb3   : > { %v1475_v5 = vmax.f32 %v360_v4, 0.0  ;;  %v493_v4 = vld [vmem:[%s1798_s3 + $0x3e0] sm:$0xff] }
  0xb5   : > { %1002 = vmatmul.msk.f32.vlgmr.msra.gmra.mxu3 %vm544_vm2, %v1475_v5  ;;  %1011 = vmatmul.msk.f32.vlgmr.msrb.gmra.mxu0 %vm544_vm2, %v1475_v5 }
  0xb6   : > { %711 = vmatpush.msra.mxu3 %v477_v6  ;;  %v487_v6 = vld [vmem:[%s1798_s3 + $0x3b0] sm:$0xff] }
  0xb8   : > { %712 = vmatpush.msra.mxu3 %v470_v8  ;;  %v362_v13 = vpop.f32.mrf.mxu1  ;;  %v486_v8 = vld [vmem:[%s1798_s3 + $0x3a8] sm:$0xff] }
  0xb9   : > { %v363_v14 = vadd.f32 %v362_v13, %v235_v10  ;;  %v473_v13 = vld [vmem:[%s1798_s3 + $0x340] sm:$0xff] }
  0xba   : > { %713 = vmatpush.msra.mxu3 %v463_v11  ;;  %v485_v11 = vld [vmem:[%s1798_s3 + $0x3a0] sm:$0xff] }
  0xbb   : > { %v1505_v17 = vmax.f32 %v363_v14, 0.0  ;;  %v466_v14 = vld [vmem:[%s1798_s3 + $0x308] sm:$0xff] }
  0xbc   : > { %714 = vmatpush.msra.mxu3 %v456_v15  ;;  %v459_v15 = vld [vmem:[%s1798_s3 + $0x2d0] sm:$0xff] }
  0xbd   : > { %1003 = vmatmul.msk.f32.gmra.mxu3 %vm544_vm2, %v1505_v17  ;;  %1012 = vmatmul.msk.f32.gmra.mxu0 %vm544_vm2, %v1505_v17 }
  0xbe   : > { %715 = vmatpush.msra.mxu3 %v449_v18  ;;  %v445_v18 = vld [vmem:[%s1798_s3 + $0x260] sm:$0xff] }
  0xc0   : > { %716 = vmatpush.msra.mxu3 %v442_v20  ;;  %v431_v20 = vld [vmem:[%s1798_s3 + $0x1f0] sm:$0xff] }
  0xc2   : > { %717 = vmatpush.msra.mxu3 %v435_v22  ;;  %v417_v22 = vld [vmem:[%s1798_s3 + $0x180] sm:$0xff] }
  0xc4   : > { %718 = vmatpush.msra.mxu3 %v428_v24  ;;  %v403_v24 = vld [vmem:[%s1798_s3 + $0x110] sm:$0xff] }
  0xc6   : > { %719 = vmatpush.msra.mxu3 %v421_v25  ;;  %v389_v25 = vld [vmem:[%s1798_s3 + $0xa0] sm:$0xff] }
  0xc8   : > { %720 = vmatpush.msra.mxu3 %v414_v26  ;;  %v382_v26 = vld [vmem:[%s1798_s3 + $0x68] sm:$0xff] }
  0xca   : > { %721 = vmatpush.msra.mxu3 %v407_v27  ;;  %v375_v27 = vld [vmem:[%s1798_s3 + $0x30] sm:$0xff] }
  0xcc   : > { %v336_v29 = vpop.f32.mrf.mxu0  ;;  %722 = vmatpush.msra.mxu3 %v400_v28 }
  0xcd   : > { %v337_v31 = vadd.f32 %v336_v29, %v1454_v60  ;;  %v534_v60 = vld [vmem:[%s1798_s3 + $0x528] sm:$0xff] }
  0xce   : > { %723 = vmatpush.msra.mxu3 %v393_v30 }
  0xcf   : > { %v1548_v32 = vmax.f32 %v337_v31, 0.0 }
  0xd0   : > { %724 = vmatpush.msra.mxu3 %v386_v34 }
  0xd1   : > { %589 = vmatmul.f32.vlgmr.msra.gmra.mxu2 %v1548_v32  ;;  %635 = vmatmul.f32.vlgmr.msrb.gmra.mxu3 %v1548_v32 }
  0xd2   : > { %681 = vmatmul.f32.vlgmr.msrb.gmra.mxu1 %v1548_v32  ;;  %1007 = vmatpush.msk.msra.mxu2 %vm551_vm1, %v539_v33 }
  0xd3   : > { %819 = vmatmul.f32.vlgmr.msra.gmra.mxu0 %v1548_v32  ;;  %1019 = vmatpush.msk.msrb.mxu1 %vm551_vm1, %v1564_v36 }
  0xd4   : > { %696 = vmatpush.msra.mxu2 %v532_v35  ;;  %v339_v40 = vpop.f32.mrf.mxu0  ;;  %725 = vmatpush.msra.mxu3 %v379_v37 }
  0xd5   : > { %v340_v42 = vadd.f32 %v339_v40, %v235_v10  ;;  %880 = vmatpush.msrb.mxu1 %v1578_v39  ;;  %v492_v10 = vld [vmem:[%s1798_s3 + $0x3d8] sm:$0xff] }
  0xd6   : > { %697 = vmatpush.msra.mxu2 %v525_v38  ;;  %726 = vmatpush.msra.mxu3 %v372_v41 }
  0xd7   : > { %v1592_v45 = vmax.f32 %v340_v42, 0.0  ;;  %881 = vmatpush.msrb.mxu1 %v1609_v49 }
  0xd8   : > { %698 = vmatpush.msra.mxu2 %v518_v43  ;;  %1016 = vmatpush.msk.msrb.mxu3 %vm551_vm1, %v542_v44 }
  0xd9   : > { %592 = vmatmul.f32.gmra.mxu2 %v1592_v45  ;;  %638 = vmatmul.f32.gmra.mxu3 %v1592_v45 }
  0xda   : > { %684 = vmatmul.f32.gmra.mxu1 %v1592_v45  ;;  %699 = vmatpush.msra.mxu2 %v511_v46 }
  0xdb   : > { %822 = vmatmul.f32.gmra.mxu0 %v1592_v45  ;;  %834 = vmatpush.msrb.mxu3 %v535_v47 }
  0xdc   : > { %700 = vmatpush.msra.mxu2 %v504_v48  ;;  %882 = vmatpush.msrb.mxu1 %v1622_v52 }
  0xdd   : > { %835 = vmatpush.msrb.mxu3 %v528_v50 }
  0xde   : > { %701 = vmatpush.msra.mxu2 %v497_v51  ;;  %883 = vmatpush.msrb.mxu1 %v515_v55 }
  0xdf   : > { %836 = vmatpush.msrb.mxu3 %v521_v53 }
  0xe0   : > { %702 = vmatpush.msra.mxu2 %v490_v54  ;;  %884 = vmatpush.msrb.mxu1 %v508_v59 }
  0xe1   : > { %1005 = vmatmul.msk.f32.vlgmr.msrb.gmra.mxu2 %vm544_vm2, %v1475_v5  ;;  %727 = vmatmul.f32.vlgmr.msra.gmra.mxu3 %v1548_v32 }
  0xe2   : > { %703 = vmatpush.msra.mxu2 %v483_v56  ;;  %773 = vmatmul.f32.vlgmr.msra.gmra.mxu1 %v1548_v32 }
  0xe3   : > { %837 = vmatpush.msrb.mxu3 %v514_v58  ;;  %885 = vmatpush.msrb.mxu1 %v501_v62 }
  0xe4   : > { %1013 = vmatpush.msk.msrb.mxu2 %vm551_vm1, %v541_v57 }
  0xe5   : > { %838 = vmatpush.msrb.mxu3 %v507_v61  ;;  %886 = vmatpush.msrb.mxu1 %v494_v1 }
  0xe6   : > { %788 = vmatpush.msrb.mxu2 %v534_v60 }
  0xe7   : > { %839 = vmatpush.msrb.mxu3 %v500_v0  ;;  %887 = vmatpush.msrb.mxu1 %v487_v6 }
  0xe8   : > { %789 = vmatpush.msrb.mxu2 %v527_v63 }
  0xe9   : > { %730 = vmatmul.f32.gmra.mxu3 %v1592_v45  ;;  %1006 = vmatmul.msk.f32.gmra.mxu2 %vm544_vm2, %v1505_v17 }
  0xea   : > { %790 = vmatpush.msrb.mxu2 %v520_v2  ;;  %776 = vmatmul.f32.gmra.mxu1 %v1592_v45 }
  0xeb   : > { %840 = vmatpush.msrb.mxu3 %v493_v4 }
  0xec   : > { %791 = vmatpush.msrb.mxu2 %v513_v3 }
  0xed   : > { %841 = vmatpush.msrb.mxu3 %v486_v8 }
  0xee   : > { %792 = vmatpush.msrb.mxu2 %v506_v7 }
  0xef   : > { %1024 = vmatpush.msk.msra.mxu3 %vm551_vm1, %v1564_v36 }
  0xf0   : > { %793 = vmatpush.msrb.mxu2 %v499_v9 }
  0xf1   : > { %1025 = vmatpush.msra.mxu3 %v1578_v39  ;;  %1008 = vmatmul.msk.f32.vlgmr.msra.gmra.mxu2 %vm544_vm2, %v1475_v5 }
  0xf2   : > { %794 = vmatpush.msrb.mxu2 %v492_v10  ;;  %1017 = vmatmul.msk.f32.vlgmr.msrb.gmra.mxu3 %vm544_vm2, %v1475_v5 }
  0xf3   : > { %1020 = vmatmul.msk.f32.vlgmr.msrb.gmra.mxu1 %vm544_vm2, %v1475_v5  ;;  %1026 = vmatpush.msra.mxu3 %v1609_v49 }
  0xf4   : > { %795 = vmatpush.msrb.mxu2 %v485_v11 }
  0xf5   : > { %1027 = vmatpush.msra.mxu3 %v1622_v52 }
  0xf6   : > { %849 = vmatpush.msra.mxu2 %v480_v12 }
  0xf7   : > { %1028 = vmatpush.msra.mxu3 %v515_v55 }
  0xf8   : > { %850 = vmatpush.msra.mxu2 %v473_v13 }
  0xf9   : > { %1009 = vmatmul.msk.f32.gmra.mxu2 %vm544_vm2, %v1505_v17  ;;  %1029 = vmatpush.msra.mxu3 %v508_v59 }
  0xfa   : > { %851 = vmatpush.msra.mxu2 %v466_v14  ;;  %1018 = vmatmul.msk.f32.gmra.mxu3 %vm544_vm2, %v1505_v17 }
  0xfb   : > { %1030 = vmatpush.msra.mxu3 %v501_v62 }
  0xfc   : > { %852 = vmatpush.msra.mxu2 %v459_v15 }
  0xfd   : > { %1031 = vmatpush.msra.mxu3 %v494_v1 }
  0xfe   : > { %853 = vmatpush.msra.mxu2 %v452_v16 }
  0xff   : > { %1032 = vmatpush.msra.mxu3 %v487_v6 }
 0x100   : > { %854 = vmatpush.msra.mxu2 %v445_v18 }
 0x101   : > { %1014 = vmatmul.msk.f32.vlgmr.msrb.gmra.mxu2 %vm544_vm2, %v1475_v5  ;;  %v396_v5 = vld [vmem:[%s1798_s3 + $0xd8] sm:$0xff] }
 0x102   : > { %855 = vmatpush.msra.mxu2 %v438_v19  ;;  %1021 = vmatmul.msk.f32.vlgmr.msra.gmra.mxu3 %vm544_vm2, %v1505_v17 }
 0x104   : > { %856 = vmatpush.msra.mxu2 %v431_v20 }
 0x106   : > { %857 = vmatpush.msra.mxu2 %v424_v21 }
 0x108   : > { %858 = vmatpush.msra.mxu2 %v417_v22 }
 0x109   : > { %1015 = vmatmul.msk.f32.gmra.mxu2 %vm544_vm2, %v1505_v17 }
 0x10a   : > { %859 = vmatpush.msra.mxu2 %v410_v23 }
 0x10c   : > { %860 = vmatpush.msra.mxu2 %v403_v24 }
 0x10e   : > { %861 = vmatpush.msra.mxu2 %v396_v5 }
 0x110   : > { %862 = vmatpush.msra.mxu2 %v389_v25 }
 0x112   : > { %863 = vmatpush.msra.mxu2 %v382_v26 }
 0x114   : > { %864 = vmatpush.msra.mxu2 %v375_v27 }
 0x115   : > { %865 = vmatmul.f32.vlgmr.msra.gmra.mxu2 %v1548_v32 }
 0x11d   : > { %868 = vmatmul.f32.gmra.mxu2 %v1592_v45 }
 0x132   : > { %v751_v35 = vpop.f32.mrf.mxu0 }
 0x138   : > { %v613_v17 = vpop.f32.mrf.mxu3 }
 0x13a   : > { %v754_v40 = vpop.f32.mrf.mxu0 }
 0x140   : > { %v616_v28 = vpop.f32.mrf.mxu3 }
 0x14f   : > { %v682_v45 = vpop.f32.mrf.mxu1 }
 0x150   : > { %v820_v46 = vpop.f32.mrf.mxu0 }
 0x154   : > { %v590_v29 = vpop.f32.mrf.mxu2  ;;  %v636_v30 = vpop.f32.mrf.mxu3 }
 0x155   : > { %v614_v31 = vadd.f32 %v613_v17, %v590_v29 }
 0x157   : > { %895 = vst [vmem:[%s1776_s24] sm:$0xff] %v614_v31  ;;  %v685_v51 = vpop.f32.mrf.mxu1 }
 0x158   : > { %v823_v52 = vpop.f32.mrf.mxu0 }
 0x15c   : > { %v593_v33 = vpop.f32.mrf.mxu2  ;;  %v639_v32 = vpop.f32.mrf.mxu3 }
 0x15d   : > { %v617_v34 = vadd.f32 %v616_v28, %v593_v33 }
 0x15f   : > { %903 = vst [vmem:[%s1776_s24 + $0x38] sm:$0xff] %v617_v34  ;;  %v774_v57 = vpop.f32.mrf.mxu1 }
 0x164   : > { %v659_v36 = vpop.f32.mrf.mxu2  ;;  %v728_v37 = vpop.f32.mrf.mxu3 }
 0x165   : > { %v660_v38 = vadd.f32 %v659_v36, %v636_v30  ;;  %v752_v39 = vadd.f32 %v751_v35, %v728_v37 }
 0x167   : > { %896 = vst [vmem:[%s1776_s24 + $0x8] sm:$0xff] %v660_v38  ;;  %v777_v60 = vpop.f32.mrf.mxu1 }
 0x168   : > { %898 = vst [vmem:[%s1776_s24 + $0x18] sm:$0xff] %v752_v39 }
 0x16c   : > { %v731_v41 = vpop.f32.mrf.mxu3  ;;  %v662_v42 = vpop.f32.mrf.mxu2 }
 0x16d   : > { %v755_v43 = vadd.f32 %v754_v40, %v731_v41  ;;  %v663_v44 = vadd.f32 %v662_v42, %v639_v32 }
 0x16f   : > { %906 = vst [vmem:[%s1776_s24 + $0x50] sm:$0xff] %v755_v43 }
 0x170   : > { %904 = vst [vmem:[%s1776_s24 + $0x40] sm:$0xff] %v663_v44  ;;  %v889_v63 = vpop.f32.mrf.mxu1 }
 0x174   : > { %v705_v48 = vpop.f32.mrf.mxu2 }
 0x175   : > { %v843_v47 = vpop.f32.mrf.mxu3  ;;  %v706_v50 = vadd.f32 %v705_v48, %v682_v45 }
 0x176   : > { %v844_v49 = vadd.f32 %v843_v47, %v820_v46 }
 0x177   : > { %897 = vst [vmem:[%s1776_s24 + $0x10] sm:$0xff] %v706_v50 }
 0x178   : > { %900 = vst [vmem:[%s1776_s24 + $0x28] sm:$0xff] %v844_v49 }
 0x17c   : > { %v708_v54 = vpop.f32.mrf.mxu2 }
 0x17d   : > { %v846_v53 = vpop.f32.mrf.mxu3  ;;  %v709_v56 = vadd.f32 %v708_v54, %v685_v51 }
 0x17e   : > { %v847_v55 = vadd.f32 %v846_v53, %v823_v52 }
 0x17f   : > { %905 = vst [vmem:[%s1776_s24 + $0x48] sm:$0xff] %v709_v56 }
 0x180   : > { %908 = vst [vmem:[%s1776_s24 + $0x60] sm:$0xff] %v847_v55 }
 0x184   : > { %v797_v58 = vpop.f32.mrf.mxu2 }
 0x185   : > { %v798_v59 = vadd.f32 %v797_v58, %v774_v57  ;;  %v892_v2 = vpop.f32.mrf.mxu3 }
 0x187   : > { %899 = vst [vmem:[%s1776_s24 + $0x20] sm:$0xff] %v798_v59 }
 0x18c   : > { %v800_v61 = vpop.f32.mrf.mxu2 }
 0x18d   : > { %v801_v62 = vadd.f32 %v800_v61, %v777_v60 }
 0x18f   : > { %907 = vst [vmem:[%s1776_s24 + $0x58] sm:$0xff] %v801_v62 }
 0x198   : > { %v866_v0 = vpop.f32.mrf.mxu2 }
 0x199   : > { %v890_v1 = vadd.f32 %v889_v63, %v866_v0 }
 0x19b   : > { %902 = vst.msk [vmem:[%s1776_s24 + $0x30] sm:$0xff] %vm901_vm3, %v890_v1 }
 0x1a0   : > { %v869_v3 = vpop.f32.mrf.mxu2 }
 0x1a1   : > { %v893_v4 = vadd.f32 %v892_v2, %v869_v3 }
 0x1a3   : > { %909 = vst.msk [vmem:[%s1776_s24 + $0x68] sm:$0xff] %vm901_vm3, %v893_v4 }
 0x1a4 PF: > { %s14_s15 = sadd.s32 1, %s1051_s15  }
 0x1a5   : > { %p11_p4 = scmp.ge.s32.totalorder %s14_s15, 4  }
 0x1a7   :  { %13 = sbr.rel (!%p11_p4) target bundleno = 1 (0x1), region = 66 }

</bundles_post_ra>
